<compile_context>
chip_gen: v5e
topology: v5e:2x2
jax: 0.10.0
libtpu: 0.0.40
codegen_flags: <defaults>
</compile_context>

<pallas_src>
import jax
import jax.numpy as jnp
from jax.experimental import pallas as pl
from jax.experimental.pallas import tpu as pltpu


def _mlp_kernel(x_ref, w1_ref, b1_ref, w2_ref, b2_ref, w3_ref, b3_ref, o_ref):
    x = x_ref[...]

    # fc1 -> ReLU  (dropout = identity at inference).
    h1 = jnp.dot(x.astype(jnp.bfloat16), w1_ref[...].astype(jnp.bfloat16),
                 preferred_element_type=jnp.float32) + b1_ref[...]
    h1 = jnp.maximum(h1, 0.0)

    # fc2 -> ReLU  (dropout = identity at inference).
    h2 = jnp.dot(h1.astype(jnp.bfloat16), w2_ref[...].astype(jnp.bfloat16),
                 preferred_element_type=jnp.float32) + b2_ref[...]
    h2 = jnp.maximum(h2, 0.0)

    # fc3 (N=1): VPU multiply + lane reduction; scalar bias from SMEM.
    logits = jnp.sum(h2 * w3_ref[...], axis=-1, keepdims=True) + b3_ref[0]

    # sigmoid in f32.
    o_ref[...] = jax.nn.sigmoid(logits)


def _round_up(n, m):
    return ((n + m - 1) // m) * m


def speaker_recognition_forward(x, params, *, tb_max=512):
    """x: (B, input_size) float32. params: dict of transposed weights/biases."""
    B, in_features = x.shape
    w1, b1 = params["w1"], params["b1"]   # (in,128), (1,128)
    w2, b2 = params["w2"], params["b2"]   # (128,64), (1,64)
    w3, b3 = params["w3"], params["b3"]   # (64,1),   (1,1)

    w3_row = w3.reshape(1, 64)            # row vector for the VPU reduction
    b3_s = b3.reshape(1)                  # scalar bias -> SMEM

    # Batch tile: multiple of 8 sublanes, capped so activations + the
    # double-buffered x tile fit comfortably even in v7x's tighter VMEM.
    TB = min(tb_max, _round_up(B, 8))
    Bp = _round_up(B, TB)
    if Bp != B:
        x = jnp.pad(x, ((0, Bp - B), (0, 0)))

    grid = (Bp // TB,)

    def resident(a):
        # Constant block index -> stays resident in VMEM across grid steps.
        return pl.BlockSpec(a.shape, lambda i: (0,) * a.ndim,
                            memory_space=pltpu.VMEM)

    flops = 2 * Bp * (in_features * 128 + 128 * 64 + 64)
    bytes_accessed = (
        (Bp * in_features + Bp) * 4
        + 4 * sum(int(p.size) for p in (w1, b1, w2, b2, w3, b3))
    )

    out = pl.pallas_call(
        _mlp_kernel,
        out_shape=jax.ShapeDtypeStruct((Bp, 1), jnp.float32),
        grid=grid,
        in_specs=[
            pl.BlockSpec((TB, in_features), lambda i: (i, 0),
                         memory_space=pltpu.VMEM),
            resident(w1), resident(b1),
            resident(w2), resident(b2),
            resident(w3_row),
            pl.BlockSpec((1,), lambda i: (0,),
                         memory_space=pltpu.MemorySpace.SMEM),
        ],
        out_specs=pl.BlockSpec((TB, 1), lambda i: (i, 0),
                               memory_space=pltpu.VMEM),
        compiler_params=pltpu.CompilerParams(
            dimension_semantics=("parallel",)),
        cost_estimate=pl.CostEstimate(
            flops=flops, transcendentals=Bp, bytes_accessed=bytes_accessed),
    )(x, w1, b1, w2, b2, w3_row, b3_s)

    return out[:B]


def init_params(key, input_size):
    """Deterministic init mirroring nn.Linear shapes (stored transposed)."""
    ks = jax.random.split(key, 6)

    def linear(kw, kb, fan_in, fan_out):
        bound = 1.0 / jnp.sqrt(fan_in)
        # PyTorch stores (out, in); we store transposed (in, out) for x @ W.
        w = jax.random.uniform(kw, (fan_in, fan_out), jnp.float32, -bound, bound)
        b = jax.random.uniform(kb, (1, fan_out), jnp.float32, -bound, bound)
        return w, b

    w1, b1 = linear(ks[0], ks[1], input_size, 128)
    w2, b2 = linear(ks[2], ks[3], 128, 64)
    w3, b3 = linear(ks[4], ks[5], 64, 1)
    return {"w1": w1, "b1": b1, "w2": w2, "b2": b2, "w3": w3, "b3": b3}


def _reference(x, params):
    """Plain-JAX reference mirroring the kernel math (bf16 dots, f32 acc)."""
    bf16 = jnp.bfloat16
    h1 = jnp.dot(x.astype(bf16), params["w1"].astype(bf16),
                 preferred_element_type=jnp.float32) + params["b1"]
    h1 = jnp.maximum(h1, 0.0)
    h2 = jnp.dot(h1.astype(bf16), params["w2"].astype(bf16),
                 preferred_element_type=jnp.float32) + params["b2"]
    h2 = jnp.maximum(h2, 0.0)
    logits = jnp.sum(h2 * params["w3"].reshape(1, -1), axis=-1, keepdims=True)
    logits = logits + params["b3"].reshape(1)
    return jax.nn.sigmoid(logits)


if __name__ == "__main__":
    key = jax.random.PRNGKey(0)
    k_x, k_p = jax.random.split(key)

    # Small shapes; batch deliberately not a multiple of 8 to exercise padding.
    batch, input_size = 20, 32
    x = jax.random.normal(k_x, (batch, input_size), jnp.float32)
    params = init_params(k_p, input_size)

    out = speaker_recognition_forward(x, params)
    out = jax.block_until_ready(out)

    ref = _reference(x, params)
    assert out.shape == (batch, 1)
    assert jnp.allclose(out, ref, atol=1e-4), "mismatch vs reference"

    print("KERNEL_OK")
</pallas_src>

<mosaic_0001>
module attributes {stable_mosaic.version = 11 : i64} {
  func.func @_mlp_kernel(%arg0: i32, %arg1: memref<24x32xf32, #tpu.memory_space<vmem>>, %arg2: memref<32x128xf32, #tpu.memory_space<vmem>>, %arg3: memref<1x128xf32, #tpu.memory_space<vmem>>, %arg4: memref<128x64xf32, #tpu.memory_space<vmem>>, %arg5: memref<1x64xf32, #tpu.memory_space<vmem>>, %arg6: memref<1x64xf32, #tpu.memory_space<vmem>>, %arg7: memref<1xf32, #tpu.memory_space<smem>>, %arg8: memref<24x1xf32, #tpu.memory_space<vmem>>) attributes {dimension_semantics = [#tpu.dimension_semantics<parallel>], iteration_bounds = array<i64: 1>, scalar_prefetch = 0 : i64, scratch_operands = 0 : i64, tpu.core_type = #tpu.core_type<tc>, window_params = [{transform_indices = @transform_0, window_bounds = array<i64: 24, 32>}, {pipeline_mode = #tpu.pipeline_mode<synchronous>, transform_indices = @transform_1, window_bounds = array<i64: 32, 128>}, {pipeline_mode = #tpu.pipeline_mode<synchronous>, transform_indices = @transform_2, window_bounds = array<i64: 1, 128>}, {pipeline_mode = #tpu.pipeline_mode<synchronous>, transform_indices = @transform_3, window_bounds = array<i64: 128, 64>}, {pipeline_mode = #tpu.pipeline_mode<synchronous>, transform_indices = @transform_4, window_bounds = array<i64: 1, 64>}, {pipeline_mode = #tpu.pipeline_mode<synchronous>, transform_indices = @transform_5, window_bounds = array<i64: 1, 64>}, {transform_indices = @transform_6, window_bounds = array<i64: 1>}, {transform_indices = @transform_7, window_bounds = array<i64: 24, 1>}]} {
    %c0 = arith.constant 0 : index
    %c0_0 = arith.constant 0 : index
    %0 = vector.load %arg1[%c0, %c0_0] : memref<24x32xf32, #tpu.memory_space<vmem>>, vector<24x32xf32>
    %1 = arith.truncf %0 : vector<24x32xf32> to vector<24x32xbf16>
    %c0_1 = arith.constant 0 : index
    %c0_2 = arith.constant 0 : index
    %2 = vector.load %arg2[%c0_1, %c0_2] : memref<32x128xf32, #tpu.memory_space<vmem>>, vector<32x128xf32>
    %3 = arith.truncf %2 : vector<32x128xf32> to vector<32x128xbf16>
    %cst = arith.constant dense<0.000000e+00> : vector<24x128xf32>
    %4 = tpu.matmul %1, %3, %cst {dimension_numbers = #tpu.dot_dimension_numbers<[1], [0], [0], [1], [0, 0, 1, 1], [], []>} : vector<24x32xbf16>, vector<32x128xbf16>, vector<24x128xf32> -> vector<24x128xf32>
    %c0_3 = arith.constant 0 : index
    %c0_4 = arith.constant 0 : index
    %5 = vector.load %arg3[%c0_3, %c0_4] : memref<1x128xf32, #tpu.memory_space<vmem>>, vector<1x128xf32>
    %6 = vector.broadcast %5 : vector<1x128xf32> to vector<24x128xf32>
    %7 = arith.addf %4, %6 : vector<24x128xf32>
    %cst_5 = arith.constant 0.000000e+00 : f32
    %8 = vector.broadcast %cst_5 : f32 to vector<24x128xf32>
    %9 = arith.maximumf %7, %8 : vector<24x128xf32>
    %10 = arith.truncf %9 : vector<24x128xf32> to vector<24x128xbf16>
    %c0_6 = arith.constant 0 : index
    %c0_7 = arith.constant 0 : index
    %11 = vector.load %arg4[%c0_6, %c0_7] : memref<128x64xf32, #tpu.memory_space<vmem>>, vector<128x64xf32>
    %12 = arith.truncf %11 : vector<128x64xf32> to vector<128x64xbf16>
    %cst_8 = arith.constant dense<0.000000e+00> : vector<24x64xf32>
    %13 = tpu.matmul %10, %12, %cst_8 {dimension_numbers = #tpu.dot_dimension_numbers<[1], [0], [0], [1], [0, 0, 1, 1], [], []>} : vector<24x128xbf16>, vector<128x64xbf16>, vector<24x64xf32> -> vector<24x64xf32>
    %c0_9 = arith.constant 0 : index
    %c0_10 = arith.constant 0 : index
    %14 = vector.load %arg5[%c0_9, %c0_10] : memref<1x64xf32, #tpu.memory_space<vmem>>, vector<1x64xf32>
    %15 = vector.broadcast %14 : vector<1x64xf32> to vector<24x64xf32>
    %16 = arith.addf %13, %15 : vector<24x64xf32>
    %cst_11 = arith.constant 0.000000e+00 : f32
    %17 = vector.broadcast %cst_11 : f32 to vector<24x64xf32>
    %18 = arith.maximumf %16, %17 : vector<24x64xf32>
    %c0_12 = arith.constant 0 : index
    %c0_13 = arith.constant 0 : index
    %19 = vector.load %arg6[%c0_12, %c0_13] : memref<1x64xf32, #tpu.memory_space<vmem>>, vector<1x64xf32>
    %20 = vector.broadcast %19 : vector<1x64xf32> to vector<24x64xf32>
    %21 = arith.mulf %18, %20 : vector<24x64xf32>
    %cst_14 = arith.constant dense<0.000000e+00> : vector<24xf32>
    %22 = vector.multi_reduction <add>, %21, %cst_14 [1] : vector<24x64xf32> to vector<24xf32>
    %23 = vector.shape_cast %22 : vector<24xf32> to vector<24x1xf32>
    %c0_15 = arith.constant 0 : index
    %24 = memref.load %arg7[%c0_15] : memref<1xf32, #tpu.memory_space<smem>>
    %25 = vector.broadcast %24 : f32 to vector<24x1xf32>
    %26 = arith.addf %23, %25 : vector<24x1xf32>
    %27 = arith.negf %26 : vector<24x1xf32>
    %28 = math.exp %27 : vector<24x1xf32>
    %cst_16 = arith.constant 1.000000e+00 : f32
    %29 = vector.broadcast %cst_16 : f32 to vector<24x1xf32>
    %30 = arith.addf %29, %28 : vector<24x1xf32>
    %31 = arith.divf %29, %30 : vector<24x1xf32>
    %c0_17 = arith.constant 0 : index
    %c0_18 = arith.constant 0 : index
    %32 = vector.load %arg8[%c0_17, %c0_18] : memref<24x1xf32, #tpu.memory_space<vmem>>, vector<24x1xf32>
    tpu.vector_store %arg8[%c0_17, %c0_18], %31 {strides = array<i32>} : memref<24x1xf32, #tpu.memory_space<vmem>>, vector<24x1xf32>,
    return
  }
  func.func @transform_0(%arg0: i32) -> (i32, i32) {
    %c0_i32 = arith.constant 0 : i32
    %c0_i32_0 = arith.constant 0 : i32
    return %arg0, %c0_i32 : i32, i32
  }
  func.func @transform_1(%arg0: i32) -> (i32, i32) {
    %c0_i32 = arith.constant 0 : i32
    %c0_i32_0 = arith.constant 0 : i32
    %c0_i32_1 = arith.constant 0 : i32
    return %c0_i32, %c0_i32_0 : i32, i32
  }
  func.func @transform_2(%arg0: i32) -> (i32, i32) {
    %c0_i32 = arith.constant 0 : i32
    %c0_i32_0 = arith.constant 0 : i32
    %c0_i32_1 = arith.constant 0 : i32
    return %c0_i32, %c0_i32_0 : i32, i32
  }
  func.func @transform_3(%arg0: i32) -> (i32, i32) {
    %c0_i32 = arith.constant 0 : i32
    %c0_i32_0 = arith.constant 0 : i32
    %c0_i32_1 = arith.constant 0 : i32
    return %c0_i32, %c0_i32_0 : i32, i32
  }
  func.func @transform_4(%arg0: i32) -> (i32, i32) {
    %c0_i32 = arith.constant 0 : i32
    %c0_i32_0 = arith.constant 0 : i32
    %c0_i32_1 = arith.constant 0 : i32
    return %c0_i32, %c0_i32_0 : i32, i32
  }
  func.func @transform_5(%arg0: i32) -> (i32, i32) {
    %c0_i32 = arith.constant 0 : i32
    %c0_i32_0 = arith.constant 0 : i32
    %c0_i32_1 = arith.constant 0 : i32
    return %c0_i32, %c0_i32_0 : i32, i32
  }
  func.func @transform_6(%arg0: i32) -> i32 {
    %c0_i32 = arith.constant 0 : i32
    %c0_i32_0 = arith.constant 0 : i32
    return %c0_i32 : i32
  }
  func.func @transform_7(%arg0: i32) -> (i32, i32) {
    %c0_i32 = arith.constant 0 : i32
    %c0_i32_0 = arith.constant 0 : i32
    return %arg0, %c0_i32 : i32, i32
  }
}

</mosaic_0001>

<bundles_post_ra>
// kernel: tpu_custom_call.1
= control target key start
LH: loop header
LB: loop body
LE: loop exit
PB: predicated region body
PF: predicated region fallthrough
CT: control target
= control target key end

     0   :  { %vm43_vm0 = vcmask 261120   ;;  %vm129_vm1 = vcmask 523264   ;;  %vm201_vm4 = vcmask 7168   ;;  %s370_s1 = inlined_call_operand.vmem [shape: f32[32,128], index: 1, kind: input, shape index: {}]   ;;  %s371_s0 = inlined_call_operand.vmem [shape: f32[24,32], index: 0, kind: input, shape index: {}]   ;;  %s372_s3 = inlined_call_operand.vmem [shape: f32[128,64], index: 3, kind: input, shape index: {}]   ;;  %s373_s2 = inlined_call_operand.vmem [shape: f32[1,128], index: 2, kind: input, shape index: {}]   ;;  %s374_s4 = inlined_call_operand.vmem [shape: f32[1,64], index: 4, kind: input, shape index: {}]   ;;  %s375_s5 = inlined_call_operand.vmem [shape: f32[1,64], index: 5, kind: input, shape index: {}]   ;;  %s376_s6 = inlined_call_operand.<no memory space> [shape: f32[1], index: 6, kind: input, shape index: {}]   ;;  %s377_s7 = inlined_call_operand.vmem [shape: f32[24,1], index: 7, kind: output, shape index: {}]  }
   0x1   :  { %v35_v0 = vld [vmem:[%s370_s1 + $0x10] sm:$0xff]  ;;  %v36_v1 = vld [vmem:[%s370_s1 + $0x18] sm:$0xff]  ;;  %v33_v2 = vld [vmem:[%s370_s1] sm:$0xff] }
   0x2   :  { %v38_v3 = vpack.c.bf16 %v36_v1, %v35_v0  ;;  %v34_v4 = vld [vmem:[%s370_s1 + $0x8] sm:$0xff]  ;;  %v28_v5 = vld [vmem:[%s371_s0] sm:$0xff]  ;;  %v87_v6 = vld [vmem:[%s372_s3 + $0x70] sm:$0xff] }
   0x3   :  { %v88_v7 = vld [vmem:[%s372_s3 + $0x78] sm:$0xff]  ;;  %v37_v8 = vpack.c.bf16 %v34_v4, %v33_v2  ;;  %v29_v9 = vld [vmem:[%s371_s0 + $0x8] sm:$0xff]  ;;  %v85_v11 = vld [vmem:[%s372_s3 + $0x60] sm:$0xff]  ;;  %v140_v2 = vstv %s376_s6 }
   0x4   :  { %56 = vmatpush.bf16.msra.mxu0 %v38_v3  ;;  %v96_v10 = vpack.c.bf16 %v88_v7, %v87_v6  ;;  %v86_v12 = vld [vmem:[%s372_s3 + $0x68] sm:$0xff]  ;;  %v31_v14 = vpack.c.bf16 %v29_v9, %v28_v5  ;;  %v83_v15 = vld [vmem:[%s372_s3 + $0x50] sm:$0xff]  ;;  %v84_v16 = vld [vmem:[%s372_s3 + $0x58] sm:$0xff] }
   0x5   :  { %v95_v13 = vpack.c.bf16 %v86_v12, %v85_v11  ;;  %v94_v17 = vpack.c.bf16 %v84_v16, %v83_v15  ;;  %v81_v18 = vld [vmem:[%s372_s3 + $0x40] sm:$0xff]  ;;  %v82_v19 = vld [vmem:[%s372_s3 + $0x48] sm:$0xff]  ;;  %v30_v21 = vld [vmem:[%s371_s0 + $0x10] sm:$0xff] }
   0x6   :  { %101 = vmatpush.bf16.msra.mxu1 %v96_v10  ;;  %214 = vmatpush.bf16.msra.mxu2 %v96_v10  ;;  %v93_v20 = vpack.c.bf16 %v82_v19, %v81_v18  ;;  %v32_v22 = vpack.c.bf16 %v30_v21, %v30_v21  ;;  %v79_v23 = vld [vmem:[%s372_s3 + $0x30] sm:$0xff]  ;;  %v80_v24 = vld [vmem:[%s372_s3 + $0x38] sm:$0xff]  ;;  %v77_v26 = vld [vmem:[%s372_s3 + $0x20] sm:$0xff] }
   0x7   :  { %v92_v25 = vpack.c.bf16 %v80_v24, %v79_v23  ;;  %v78_v27 = vld [vmem:[%s372_s3 + $0x28] sm:$0xff]  ;;  %v75_v29 = vld [vmem:[%s372_s3 + $0x10] sm:$0xff]  ;;  %v76_v30 = vld [vmem:[%s372_s3 + $0x18] sm:$0xff] }
   0x8   :  { %57 = vmatpush.bf16.msra.mxu0 %v37_v8  ;;  %v91_v28 = vpack.c.bf16 %v78_v27, %v77_v26  ;;  %v90_v31 = vpack.c.bf16 %v76_v30, %v75_v29  ;;  %v73_v32 = vld [vmem:[%s372_s3] sm:$0xff]  ;;  %v74_v33 = vld [vmem:[%s372_s3 + $0x8] sm:$0xff] }
   0x9   :  { %v89_v34 = vpack.c.bf16 %v74_v33, %v73_v32  ;;  %v222_v36 = vld [vmem:[%s373_s2] ss:$0 sm:$0xff] }
   0xa   :  { %102 = vmatpush.bf16.msra.mxu1 %v95_v13  ;;  %215 = vmatpush.bf16.msra.mxu2 %v95_v13  ;;  %v223_v48 = vld [vmem:[%s374_s4] ss:$0 sm:$0xff] }
   0xb   :  { %209 = vmatmul.msk.bf16.vlgmr.msra.gmra.mxu0 %vm43_vm0, %v31_v14  ;;  %v224_v51 = vld [vmem:[%s375_s5] ss:$0 sm:$0xff] }
   0xe   :  { %103 = vmatpush.bf16.msra.mxu1 %v94_v17  ;;  %216 = vmatpush.bf16.msra.mxu2 %v94_v17 }
  0x12   :  { %104 = vmatpush.bf16.msra.mxu1 %v93_v20  ;;  %217 = vmatpush.bf16.msra.mxu2 %v93_v20 }
  0x16   :  { %105 = vmatpush.bf16.msra.mxu1 %v92_v25  ;;  %218 = vmatpush.bf16.msra.mxu2 %v92_v25 }
  0x1a   :  { %106 = vmatpush.bf16.msra.mxu1 %v91_v28  ;;  %219 = vmatpush.bf16.msra.mxu2 %v91_v28 }
  0x1b   :  { %210 = vmatmul.msk.bf16.gmra.mxu0 %vm43_vm0, %v32_v22 }
  0x1e   :  { %107 = vmatpush.bf16.msra.mxu1 %v90_v31  ;;  %220 = vmatpush.bf16.msra.mxu2 %v90_v31 }
  0x22   :  { %108 = vmatpush.bf16.msra.mxu1 %v89_v34  ;;  %221 = vmatpush.bf16.msra.mxu2 %v89_v34 }
  0x88   :  { %v59_v35 = vpop.f32.mrf.mxu0 }
  0x89   :  { %v60_v37 = vadd.f32 %v222_v36, %v59_v35 }
  0x8b   :  { %v68_v40 = vmax.f32 %v60_v37, 0.0 }
  0x90   :  { %v61_v38 = vpop.f32.mrf.mxu0 }
  0x91   :  { %v62_v39 = vadd.f32 %v222_v36, %v61_v38 }
  0x93   :  { %v69_v41 = vmax.f32 %v62_v39, 0.0 }
  0x95   :  { %v71_v42 = vpack.c.bf16 %v69_v41, %v68_v40 }
  0x97   :  { %109 = vmatmul.bf16.vlgmr.msra.gmra.mxu1 %v71_v42 }
  0x98   :  { %v64_v43 = vpop.f32.mrf.mxu0 }
  0x99   :  { %v65_v44 = vadd.f32 %v222_v36, %v64_v43 }
  0x9b   :  { %v70_v45 = vmax.f32 %v65_v44, 0.0 }
  0x9d   :  { %v72_v46 = vpack.c.bf16 %v70_v45, %v70_v45 }
  0x9f   :  { %114 = vmatmul.bf16.vlgmr.msra.gmra.mxu2 %v72_v46 }
  0xa0   :  { %v66_v47 = vpop.f32.mrf.mxu0 }
 0x114   :  { %v110_v49 = vpop.f32.mrf.mxu1 }
 0x115   :  { %v111_v50 = vadd.f32 %v223_v48, %v110_v49 }
 0x117   :  { %v119_v52 = vmax.f32 %v111_v50, 0.0 }
 0x119   :  { %v126_v53 = vmul.f32 %v224_v51, %v119_v52 }
 0x11b   :  { %v130_v54 = vsel %vm129_vm1, %v126_v53, 0.0 }
 0x11c   :  { %v112_v55 = vpop.f32.mrf.mxu1  ;;  %131 = vadd.xlane.f32.xlu0 %v130_v54 }
 0x11d   :  { %v113_v56 = vadd.f32 %v223_v48, %v112_v55 }
 0x11f   :  { %v120_v57 = vmax.f32 %v113_v56, 0.0 }
 0x121   :  { %v127_v58 = vmul.f32 %v224_v51, %v120_v57 }
 0x122   :  { %v115_v59 = vpop.f32.mrf.mxu2 }
 0x123   :  { %v116_v60 = vadd.f32 %v223_v48, %v115_v59  ;;  %v133_v61 = vsel %vm129_vm1, %v127_v58, 0.0 }
 0x124   :  { %134 = vadd.xlane.f32.xlu0 %v133_v61 }
 0x125   :  { %v121_v62 = vmax.f32 %v116_v60, 0.0 }
 0x127   :  { %v128_v63 = vmul.f32 %v224_v51, %v121_v62 }
 0x129   :  { %v136_v0 = vsel %vm129_vm1, %v128_v63, 0.0 }
 0x12a   :  { %v117_v1 = vpop.f32.mrf.mxu2  ;;  %137 = vadd.xlane.f32.xlu1 %v136_v0 }
 0x18f   :  { %v132_v3 = vpop.xlane.xlu0 %131 }
 0x190   :  { %v141_v4 = vadd.f32 %v140_v2, %v132_v3 }
 0x192   :  { %v211_v5 = vmul.f32 -1.442695, %v141_v4 }
 0x194   :  { %225 = vpow2.f32 %v211_v5 }
 0x197   :  { %v135_v6 = vpop.xlane.xlu0 %134 }
 0x198   :  { %v142_v7 = vadd.f32 %v140_v2, %v135_v6 }
 0x19a   :  { %v226_v8 = vpop.eup %225  ;;  %v212_v9 = vmul.f32 -1.442695, %v142_v7 }
 0x19b   :  { %v153_v10 = vadd.f32 1.0, %v226_v8 }
 0x19c   :  { %227 = vpow2.f32 %v212_v9 }
 0x19d   :  { %229 = vrcp.f32 %v153_v10  ;;  %v138_v11 = vpop.xlane.xlu1 %137  ;;  %v167_v19 = vand.u32 2147483648, %v153_v10  ;;  %v165_v22 = vand.u32 2147483647, %v153_v10  ;;  %vm161_vm3 = vweird.f32 %v153_v10 }
 0x19e   :  { %v143_v12 = vadd.f32 %v140_v2, %v138_v11 }
 0x19f   :  { %v168_v26 = vor.u32 1.1754944e-38, %v167_v19  ;;  %vm166_vm6 = vcmp.eq.f32.partialorder %v165_v22, 8.507059e+37 }
 0x1a0   :  { %v213_v13 = vmul.f32 -1.442695, %v143_v12 }
 0x1a2   :  { %v228_v14 = vpop.eup %227  ;;  %231 = vpow2.f32 %v213_v13 }
 0x1a3   :  { %v230_v15 = vpop.eup %229  ;;  %v154_v16 = vadd.f32 1.0, %v228_v14 }
 0x1a4   :  { %v157_v17 = vmul.f32 %v230_v15, %v153_v10  ;;  %vm162_vm2 = vweird.f32 %v230_v15 }
 0x1a5   :  { %233 = vrcp.f32 %v154_v16  ;;  %vm163_vm5 = vmor %vm161_vm3, %vm162_vm2  ;;  %v182_v31 = vand.u32 2147483648, %v154_v16  ;;  %v180_v33 = vand.u32 2147483647, %v154_v16  ;;  %vm176_vm8 = vweird.f32 %v154_v16 }
 0x1a6   :  { %v158_v18 = vsub.f32 1.0, %v157_v17 }
 0x1a7   :  { %v183_v37 = vor.u32 1.1754944e-38, %v182_v31  ;;  %vm181_vm10 = vcmp.eq.f32.partialorder %v180_v33, 8.507059e+37 }
 0x1a8   :  { %v232_v20 = vpop.eup %231  ;;  %v159_v21 = vmul.f32 %v230_v15, %v158_v18 }
 0x1a9   :  { %v155_v23 = vadd.f32 1.0, %v232_v20 }
 0x1aa   :  { %v160_v24 = vadd.f32 %v230_v15, %v159_v21 }
 0x1ab   :  { %v234_v25 = vpop.eup %233  ;;  %235 = vrcp.f32 %v155_v23  ;;  %v197_v41 = vand.u32 2147483648, %v155_v23  ;;  %v195_v43 = vand.u32 2147483647, %v155_v23  ;;  %vm191_vm12 = vweird.f32 %v155_v23 }
 0x1ac   :  { %v164_v27 = vsel %vm163_vm5, %v230_v15, %v160_v24  ;;  %v172_v28 = vmul.f32 %v234_v25, %v154_v16  ;;  %vm177_vm7 = vweird.f32 %v234_v25 }
 0x1ad   :  { %v169_v29 = vsel %vm166_vm6, %v168_v26, %v164_v27  ;;  %vm178_vm9 = vmor %vm176_vm8, %vm177_vm7  ;;  %v198_v45 = vor.u32 1.1754944e-38, %v197_v41  ;;  %vm196_vm14 = vcmp.eq.f32.partialorder %v195_v43, 8.507059e+37 }
 0x1ae   :  { %202 = vst.msk [vmem:[%s377_s7] sm:$0xff] %vm201_vm4, %v169_v29  ;;  %v173_v30 = vsub.f32 1.0, %v172_v28 }
 0x1b0   :  { %v174_v32 = vmul.f32 %v234_v25, %v173_v30 }
 0x1b1   :  { %v236_v34 = vpop.eup %235 }
 0x1b2   :  { %v175_v35 = vadd.f32 %v234_v25, %v174_v32  ;;  %v187_v36 = vmul.f32 %v236_v34, %v155_v23  ;;  %vm192_vm11 = vweird.f32 %v236_v34 }
 0x1b3   :  { %vm193_vm13 = vmor %vm191_vm12, %vm192_vm11 }
 0x1b4   :  { %v179_v38 = vsel %vm178_vm9, %v234_v25, %v175_v35  ;;  %v188_v39 = vsub.f32 1.0, %v187_v36 }
 0x1b5   :  { %v184_v40 = vsel %vm181_vm10, %v183_v37, %v179_v38 }
 0x1b6   :  { %203 = vst.msk [vmem:[%s377_s7 + $0x8] sm:$0xff] %vm201_vm4, %v184_v40  ;;  %v189_v42 = vmul.f32 %v236_v34, %v188_v39 }
 0x1b8   :  { %v190_v44 = vadd.f32 %v236_v34, %v189_v42 }
 0x1ba   :  { %v194_v46 = vsel %vm193_vm13, %v236_v34, %v190_v44 }
 0x1bb   :  { %v199_v47 = vsel %vm196_vm14, %v198_v45, %v194_v46 }
 0x1bc   :  { %204 = vst.msk [vmem:[%s377_s7 + $0x10] sm:$0xff] %vm201_vm4, %v199_v47 }

</bundles_post_ra>
